<compile_context>
chip_gen: v7x
topology: tpu7x:2x2x1
jax: 0.10.0
libtpu: 0.0.40
codegen_flags: <defaults>
</compile_context>

<pallas_src>
import jax
import jax.numpy as jnp
from jax.experimental import pallas as pl
from jax.experimental.pallas import tpu as pltpu


def _round_up(x, m):
    return ((x + m - 1) // m) * m


def item_tower_kernel(item_ids_ref, cat_ids_ref, table_ref, w1_ref, b1_ref,
                      w2_ref, b2_ref, out_ref):
    """Fused gather + MLP for one row tile.

    concat([item_emb, cat_emb]) is produced by a single one-hot matmul against a
    block-diagonal stacked table; fc1 / fc2 run in bf16 on the MXU with f32
    accumulation; bias adds and relus are f32.
    """
    tn = out_ref.shape[0]
    two_v = table_ref.shape[0]
    v_pad = two_v // 2

    lanes = jax.lax.broadcasted_iota(jnp.int32, (tn, two_v), 1)
    # Disjoint lane ranges (item ids hit [0, V_pad), cat ids hit [V_pad, 2*V_pad)),
    # so the sum of the two selects is still a 0/1 matrix. Exact gather.
    one_hot = (
        jnp.where(lanes == item_ids_ref[...], 1.0, 0.0)
        + jnp.where(lanes == cat_ids_ref[...] + v_pad, 1.0, 0.0)
    ).astype(table_ref.dtype)

    combined = jnp.dot(one_hot, table_ref[...],
                       preferred_element_type=jnp.float32)          # (TN, 2E) == concat
    h = (
        jnp.dot(combined.astype(w1_ref.dtype), w1_ref[...],
                preferred_element_type=jnp.float32)
        + b1_ref[...]                                                # (1, H) broadcasts
    )
    h = jnp.maximum(h, 0.0)                                          # relu
    h2 = (
        jnp.dot(h.astype(w2_ref.dtype), w2_ref[...],
                preferred_element_type=jnp.float32)
        + b2_ref[...]
    )
    out_ref[...] = jnp.maximum(h2, 0.0).astype(out_ref.dtype)        # relu


def init_params(key, embedding_dim, hidden_dim, vocab_size):
    k1, k2, k3, k4, k5, k6 = jax.random.split(key, 6)
    # nn.Embedding ~ N(0, 1); nn.Linear ~ U(-1/sqrt(fan_in), 1/sqrt(fan_in))
    lim1 = 1.0 / jnp.sqrt(2.0 * embedding_dim)
    lim2 = 1.0 / jnp.sqrt(float(hidden_dim))
    return {
        "item_emb": jax.random.normal(k1, (vocab_size, embedding_dim), jnp.float32),
        "cat_emb": jax.random.normal(k2, (vocab_size, embedding_dim), jnp.float32),
        # stored as (in, out): y = x @ W + b   (== torch's x @ W.T + b)
        "w1": jax.random.uniform(k3, (2 * embedding_dim, hidden_dim), jnp.float32, -lim1, lim1),
        "b1": jax.random.uniform(k4, (hidden_dim,), jnp.float32, -lim1, lim1),
        "w2": jax.random.uniform(k5, (hidden_dim, hidden_dim), jnp.float32, -lim2, lim2),
        "b2": jax.random.uniform(k6, (hidden_dim,), jnp.float32, -lim2, lim2),
    }


def _pick_row_tile(n_rows, h, resident_bytes, max_tn=1024,
                   vmem_budget_bytes=40 * 1024 * 1024):
    """Largest row tile (multiple of 16, <= max_tn) whose footprint — double-buffered
    resident weights plus double-buffered id/output tiles — fits the VMEM budget
    (chosen to be safe on v7x's 64 MiB/TC as well as v5e/v6e)."""
    tn = min(max_tn, _round_up(n_rows, 16))

    # Keep >= ~8 grid steps when there's enough work: v7x splits the single parallel
    # axis across 2 TensorCores and the pipeline needs steps to overlap DMA with.
    min_steps = 8
    if n_rows >= min_steps * 16:
        tn = min(tn, _round_up((n_rows + min_steps - 1) // min_steps, 16))

    def stream(t):
        # double-buffered per-step traffic: two (t, 1) int32 id tiles + one (t, h) f32 out tile
        return 2 * (2 * t * 4 + t * h * 4)

    while tn > 16 and 2 * resident_bytes + stream(tn) > vmem_budget_bytes:
        tn = max(16, _round_up(tn // 2, 16))
    return tn


def item_tower_forward(item_ids, category_ids, params, *,
                       compute_dtype=jnp.bfloat16, max_row_tile=1024):
    # Mirror the torch dim-normalization logic.
    while item_ids.ndim > 2:
        item_ids = jnp.squeeze(item_ids, 1)
    while category_ids.ndim > 2:
        category_ids = jnp.squeeze(category_ids, 1)
    if item_ids.ndim == 1:
        item_ids = item_ids[:, None]
    if category_ids.ndim == 1:
        category_ids = category_ids[:, None]

    batch_size, seq_len = item_ids.shape
    N = batch_size * seq_len
    vocab, E = params["item_emb"].shape
    H = params["w1"].shape[1]
    cdt = jnp.dtype(compute_dtype)

    # One-hot contraction dim, lane-friendly: 2 * V_pad is a multiple of 128 for any vocab.
    V_pad = _round_up(vocab, 64)

    # Block-diagonal stacked table: one one-hot matmul yields concat([item_emb, cat_emb]).
    table = jnp.zeros((2 * V_pad, 2 * E), jnp.float32)
    table = table.at[:vocab, :E].set(params["item_emb"])
    table = table.at[V_pad:V_pad + vocab, E:].set(params["cat_emb"])
    table = table.astype(cdt)

    w1 = params["w1"].astype(cdt)                                # (2E, H)
    w2 = params["w2"].astype(cdt)                                # (H, H)
    b1 = params["b1"].reshape(1, H).astype(jnp.float32)
    b2 = params["b2"].reshape(1, H).astype(jnp.float32)

    ids_i = item_ids.reshape(-1, 1).astype(jnp.int32)            # (N, 1)
    ids_c = category_ids.reshape(-1, 1).astype(jnp.int32)        # (N, 1)

    resident_bytes = int(table.size * cdt.itemsize + w1.size * cdt.itemsize
                         + w2.size * cdt.itemsize + (b1.size + b2.size) * 4)
    TN = _pick_row_tile(N, H, resident_bytes, max_tn=max_row_tile)
    grid = (pl.cdiv(N, TN),)

    stream_bytes = 2 * (2 * TN * 4 + TN * H * 4)                 # double-buffered ids + out
    vmem_needed = 2 * resident_bytes + stream_bytes
    vmem_limit = int(min(60 * 2**20, max(8 * 2**20, 2 * vmem_needed)))

    flops = 2 * N * (2 * V_pad * 2 * E + 2 * E * H + H * H)
    bytes_accessed = 2 * N * 4 + resident_bytes + N * H * 4

    row_spec = lambda width: pl.BlockSpec((TN, width), lambda i: (i, 0))
    resident = lambda arr: pl.BlockSpec(arr.shape, lambda i: (0, 0))   # VMEM-resident across steps

    out = pl.pallas_call(
        item_tower_kernel,
        out_shape=jax.ShapeDtypeStruct((N, H), jnp.float32),
        grid=grid,
        in_specs=[
            row_spec(1),            # item ids tile (TN, 1)
            row_spec(1),            # category ids tile (TN, 1)
            resident(table),        # stacked block-diagonal embedding table
            resident(w1),           # fc1 weight (2E, H)
            resident(b1),           # fc1 bias   (1, H)
            resident(w2),           # fc2 weight (H, H)
            resident(b2),           # fc2 bias   (1, H)
        ],
        out_specs=row_spec(H),      # dense (N, H) output, no padding, no post-slice
        compiler_params=pltpu.CompilerParams(
            dimension_semantics=("parallel",),
            vmem_limit_bytes=vmem_limit),
        cost_estimate=pl.CostEstimate(flops=flops, transcendentals=0,
                                      bytes_accessed=bytes_accessed),
    )(ids_i, ids_c, table, w1, b1, w2, b2)

    # Metadata-only reshape (contiguous split of the leading dim) — no extra HBM pass.
    return out.reshape(batch_size, seq_len, H)


if __name__ == "__main__":
    embedding_dim = 16
    hidden_dim = 32
    vocab_size = 50
    batch = 2
    seq = 8

    key = jax.random.PRNGKey(0)
    kp, ki, kc = jax.random.split(key, 3)
    params = init_params(kp, embedding_dim, hidden_dim, vocab_size)

    item_ids = jax.random.randint(ki, (batch, seq), 0, vocab_size, dtype=jnp.int32)
    category_ids = jax.random.randint(kc, (batch, seq), 0, vocab_size, dtype=jnp.int32)

    out = item_tower_forward(item_ids, category_ids, params)
    out = jax.block_until_ready(out)

    # Reference in plain JAX, mirroring the kernel's bf16 rounding of weights / tables /
    # the hidden activation (with f32 accumulation), so the comparison stays tight.
    # NOTE: this deviates from the pure-f32 torch module at the ~1e-2 level by design.
    def bf16_round(x):
        return x.astype(jnp.bfloat16).astype(jnp.float32)

    iids = item_ids.reshape(-1)
    cids = category_ids.reshape(-1)
    item_emb = bf16_round(params["item_emb"])[iids]
    cat_emb = bf16_round(params["cat_emb"])[cids]
    combined = jnp.concatenate([item_emb, cat_emb], axis=-1)
    w1 = bf16_round(params["w1"])
    w2 = bf16_round(params["w2"])
    h = jnp.maximum(combined @ w1 + params["b1"], 0.0)
    ref = jnp.maximum(bf16_round(h) @ w2 + params["b2"], 0.0)
    ref = ref.reshape(batch, seq, hidden_dim)

    assert out.shape == (batch, seq, hidden_dim), out.shape
    assert jnp.allclose(out, ref, atol=1e-2, rtol=1e-2), float(jnp.max(jnp.abs(out - ref)))
    print("KERNEL_OK")
</pallas_src>

<mosaic_0001>
module attributes {stable_mosaic.version = 11 : i64} {
  func.func @item_tower_kernel(%arg0: i32, %arg1: memref<16x1xi32, #tpu.memory_space<vmem>>, %arg2: memref<16x1xi32, #tpu.memory_space<vmem>>, %arg3: memref<128x32xbf16, #tpu.memory_space<vmem>>, %arg4: memref<32x32xbf16, #tpu.memory_space<vmem>>, %arg5: memref<1x32xf32, #tpu.memory_space<vmem>>, %arg6: memref<32x32xbf16, #tpu.memory_space<vmem>>, %arg7: memref<1x32xf32, #tpu.memory_space<vmem>>, %arg8: memref<16x32xf32, #tpu.memory_space<vmem>>) attributes {dimension_semantics = [#tpu.dimension_semantics<parallel>], iteration_bounds = array<i64: 1>, scalar_prefetch = 0 : i64, scratch_operands = 0 : i64, tpu.core_type = #tpu.core_type<tc>, window_params = [{transform_indices = @transform_0, window_bounds = array<i64: 16, 1>}, {transform_indices = @transform_1, window_bounds = array<i64: 16, 1>}, {pipeline_mode = #tpu.pipeline_mode<synchronous>, transform_indices = @transform_2, window_bounds = array<i64: 128, 32>}, {pipeline_mode = #tpu.pipeline_mode<synchronous>, transform_indices = @transform_3, window_bounds = array<i64: 32, 32>}, {pipeline_mode = #tpu.pipeline_mode<synchronous>, transform_indices = @transform_4, window_bounds = array<i64: 1, 32>}, {pipeline_mode = #tpu.pipeline_mode<synchronous>, transform_indices = @transform_5, window_bounds = array<i64: 32, 32>}, {pipeline_mode = #tpu.pipeline_mode<synchronous>, transform_indices = @transform_6, window_bounds = array<i64: 1, 32>}, {transform_indices = @transform_7, window_bounds = array<i64: 16, 32>}]} {
    %0 = tpu.iota {dimensions = array<i32: 1>} : vector<16x128xi32>
    %c0 = arith.constant 0 : index
    %c0_0 = arith.constant 0 : index
    %1 = vector.load %arg1[%c0, %c0_0] : memref<16x1xi32, #tpu.memory_space<vmem>>, vector<16x1xi32>
    %2 = vector.broadcast %1 : vector<16x1xi32> to vector<16x128xi32>
    %3 = arith.cmpi eq, %0, %2 : vector<16x128xi32>
    %cst = arith.constant 1.000000e+00 : f32
    %cst_1 = arith.constant 0.000000e+00 : f32
    %4 = vector.broadcast %cst : f32 to vector<16x128xf32>
    %5 = vector.broadcast %cst_1 : f32 to vector<16x128xf32>
    %6 = arith.select %3, %4, %5 : vector<16x128xi1>, vector<16x128xf32>
    %c0_2 = arith.constant 0 : index
    %c0_3 = arith.constant 0 : index
    %7 = vector.load %arg2[%c0_2, %c0_3] : memref<16x1xi32, #tpu.memory_space<vmem>>, vector<16x1xi32>
    %c64_i32 = arith.constant 64 : i32
    %8 = vector.broadcast %c64_i32 : i32 to vector<16x1xi32>
    %9 = arith.addi %7, %8 : vector<16x1xi32>
    %10 = vector.broadcast %9 : vector<16x1xi32> to vector<16x128xi32>
    %11 = arith.cmpi eq, %0, %10 : vector<16x128xi32>
    %cst_4 = arith.constant 1.000000e+00 : f32
    %cst_5 = arith.constant 0.000000e+00 : f32
    %12 = vector.broadcast %cst_4 : f32 to vector<16x128xf32>
    %13 = vector.broadcast %cst_5 : f32 to vector<16x128xf32>
    %14 = arith.select %11, %12, %13 : vector<16x128xi1>, vector<16x128xf32>
    %15 = arith.addf %6, %14 : vector<16x128xf32>
    %16 = arith.truncf %15 : vector<16x128xf32> to vector<16x128xbf16>
    %c0_6 = arith.constant 0 : index
    %c0_7 = arith.constant 0 : index
    %17 = vector.load %arg3[%c0_6, %c0_7] : memref<128x32xbf16, #tpu.memory_space<vmem>>, vector<128x32xbf16>
    %cst_8 = arith.constant dense<0.000000e+00> : vector<16x32xf32>
    %18 = tpu.matmul %16, %17, %cst_8 {dimension_numbers = #tpu.dot_dimension_numbers<[1], [0], [0], [1], [0, 0, 1, 1], [], []>} : vector<16x128xbf16>, vector<128x32xbf16>, vector<16x32xf32> -> vector<16x32xf32>
    %19 = arith.truncf %18 : vector<16x32xf32> to vector<16x32xbf16>
    %c0_9 = arith.constant 0 : index
    %c0_10 = arith.constant 0 : index
    %20 = vector.load %arg4[%c0_9, %c0_10] : memref<32x32xbf16, #tpu.memory_space<vmem>>, vector<32x32xbf16>
    %cst_11 = arith.constant dense<0.000000e+00> : vector<16x32xf32>
    %21 = tpu.matmul %19, %20, %cst_11 {dimension_numbers = #tpu.dot_dimension_numbers<[1], [0], [0], [1], [0, 0, 1, 1], [], []>} : vector<16x32xbf16>, vector<32x32xbf16>, vector<16x32xf32> -> vector<16x32xf32>
    %c0_12 = arith.constant 0 : index
    %c0_13 = arith.constant 0 : index
    %22 = vector.load %arg5[%c0_12, %c0_13] : memref<1x32xf32, #tpu.memory_space<vmem>>, vector<1x32xf32>
    %23 = vector.broadcast %22 : vector<1x32xf32> to vector<16x32xf32>
    %24 = arith.addf %21, %23 : vector<16x32xf32>
    %cst_14 = arith.constant 0.000000e+00 : f32
    %25 = vector.broadcast %cst_14 : f32 to vector<16x32xf32>
    %26 = arith.maximumf %24, %25 : vector<16x32xf32>
    %27 = arith.truncf %26 : vector<16x32xf32> to vector<16x32xbf16>
    %c0_15 = arith.constant 0 : index
    %c0_16 = arith.constant 0 : index
    %28 = vector.load %arg6[%c0_15, %c0_16] : memref<32x32xbf16, #tpu.memory_space<vmem>>, vector<32x32xbf16>
    %cst_17 = arith.constant dense<0.000000e+00> : vector<16x32xf32>
    %29 = tpu.matmul %27, %28, %cst_17 {dimension_numbers = #tpu.dot_dimension_numbers<[1], [0], [0], [1], [0, 0, 1, 1], [], []>} : vector<16x32xbf16>, vector<32x32xbf16>, vector<16x32xf32> -> vector<16x32xf32>
    %c0_18 = arith.constant 0 : index
    %c0_19 = arith.constant 0 : index
    %30 = vector.load %arg7[%c0_18, %c0_19] : memref<1x32xf32, #tpu.memory_space<vmem>>, vector<1x32xf32>
    %31 = vector.broadcast %30 : vector<1x32xf32> to vector<16x32xf32>
    %32 = arith.addf %29, %31 : vector<16x32xf32>
    %cst_20 = arith.constant 0.000000e+00 : f32
    %33 = vector.broadcast %cst_20 : f32 to vector<16x32xf32>
    %34 = arith.maximumf %32, %33 : vector<16x32xf32>
    %c0_21 = arith.constant 0 : index
    %c0_22 = arith.constant 0 : index
    %35 = vector.load %arg8[%c0_21, %c0_22] : memref<16x32xf32, #tpu.memory_space<vmem>>, vector<16x32xf32>
    tpu.vector_store %arg8[%c0_21, %c0_22], %34 {strides = array<i32>} : memref<16x32xf32, #tpu.memory_space<vmem>>, vector<16x32xf32>,
    return
  }
  func.func @transform_0(%arg0: i32) -> (i32, i32) {
    %c0_i32 = arith.constant 0 : i32
    %c0_i32_0 = arith.constant 0 : i32
    return %arg0, %c0_i32 : i32, i32
  }
  func.func @transform_1(%arg0: i32) -> (i32, i32) {
    %c0_i32 = arith.constant 0 : i32
    %c0_i32_0 = arith.constant 0 : i32
    return %arg0, %c0_i32 : i32, i32
  }
  func.func @transform_2(%arg0: i32) -> (i32, i32) {
    %c0_i32 = arith.constant 0 : i32
    %c0_i32_0 = arith.constant 0 : i32
    %c0_i32_1 = arith.constant 0 : i32
    return %c0_i32, %c0_i32_0 : i32, i32
  }
  func.func @transform_3(%arg0: i32) -> (i32, i32) {
    %c0_i32 = arith.constant 0 : i32
    %c0_i32_0 = arith.constant 0 : i32
    %c0_i32_1 = arith.constant 0 : i32
    return %c0_i32, %c0_i32_0 : i32, i32
  }
  func.func @transform_4(%arg0: i32) -> (i32, i32) {
    %c0_i32 = arith.constant 0 : i32
    %c0_i32_0 = arith.constant 0 : i32
    %c0_i32_1 = arith.constant 0 : i32
    return %c0_i32, %c0_i32_0 : i32, i32
  }
  func.func @transform_5(%arg0: i32) -> (i32, i32) {
    %c0_i32 = arith.constant 0 : i32
    %c0_i32_0 = arith.constant 0 : i32
    %c0_i32_1 = arith.constant 0 : i32
    return %c0_i32, %c0_i32_0 : i32, i32
  }
  func.func @transform_6(%arg0: i32) -> (i32, i32) {
    %c0_i32 = arith.constant 0 : i32
    %c0_i32_0 = arith.constant 0 : i32
    %c0_i32_1 = arith.constant 0 : i32
    return %c0_i32, %c0_i32_0 : i32, i32
  }
  func.func @transform_7(%arg0: i32) -> (i32, i32) {
    %c0_i32 = arith.constant 0 : i32
    %c0_i32_0 = arith.constant 0 : i32
    return %arg0, %c0_i32 : i32, i32
  }
}

</mosaic_0001>

<bundles_post_ra>
// kernel: tpu_custom_call.1
= control target key start
LH: loop header
LB: loop body
LE: loop exit
PB: predicated region body
PF: predicated region fallthrough
CT: control target
= control target key end

     0   :  { %v434_v2 = vmov 0   ;;  %v435_v5 = vmov 0.0   ;;  %vm436_vm0 = vmmov 0   ;;  %s572_s0 = inlined_call_operand.vmem [shape: s32[16,1], index: 0, kind: input, shape index: {}]   ;;  %s573_s1 = inlined_call_operand.vmem [shape: s32[16,1], index: 1, kind: input, shape index: {}]   ;;  %s574_s2 = inlined_call_operand.vmem [shape: bf16[128,32], index: 2, kind: input, shape index: {}]   ;;  %s575_s3 = inlined_call_operand.vmem [shape: bf16[32,32], index: 3, kind: input, shape index: {}]   ;;  %s576_s4 = inlined_call_operand.vmem [shape: f32[1,32], index: 4, kind: input, shape index: {}]   ;;  %s577_s5 = inlined_call_operand.vmem [shape: bf16[32,32], index: 5, kind: input, shape index: {}]   ;;  %s578_s6 = inlined_call_operand.vmem [shape: f32[1,32], index: 6, kind: input, shape index: {}]   ;;  %s579_s7 = inlined_call_operand.hbm [shape: f32[16,32], index: 7, kind: output, shape index: {}]  }
   0x1   :  { %v30_v0 = vld [vmem:[%s572_s0] sm:$0xff]  ;;  %396 = vset.pattern.permute.xlu0 %v434_v2  ;;  %397 = vset.pattern.permute.xlu1 %v434_v2  ;;  %v43_v4 = vld [vmem:[%s573_s1 + $0x8] sm:$0xff]  ;;  %v400_v10 = vld [vmem:[%s574_s2 + $0x10] sm:$0xff]  }
   0x2   :  { %v42_v1 = vld [vmem:[%s573_s1] sm:$0xff]  ;;  %33 = vperm.xlu0 %396, %v30_v0   ;;  %354 = vmatprep.subr.bf16.mxu0 %v435_v5  ;;  %v31_v7 = vld [vmem:[%s572_s0 + $0x8] sm:$0xff]  ;;  %v45_v8 = vadd.s32 64, %v43_v4  ;;  %v401_v11 = vld [vmem:[%s574_s2 + $0x18] sm:$0xff]  }
   0x3   :  { %v44_v3 = vadd.s32 64, %v42_v1  ;;  %v398_v6 = vld [vmem:[%s574_s2] sm:$0xff]   ;;  %374 = vmatprep.subr.bf16.mxu1 %v435_v5  ;;  %v399_v9 = vld [vmem:[%s574_s2 + $0x8] sm:$0xff]   ;;  %370 = vmatprep.mubr.msk.bf16.mxu0 %vm436_vm0, %v435_v5 }
   0x4   :  { %355 = vmatpush3.bf16.msra.mxu0 %v398_v6  ;;  %378 = vmatprep.mubr.msk.bf16.mxu1 %vm436_vm0, %v435_v5 }
   0x5   :  { %47 = vperm.xlu1 %397, %v44_v3   ;;  %356 = vmatprep.subr.bf16.mxu0 %v435_v5 }
   0x6   :  { %36 = vperm.xlu0 %396, %v31_v7  }
   0x8   :  { %357 = vmatpush3.bf16.msra.mxu0 %v399_v9 }
   0x9   :  { %50 = vperm.xlu1 %397, %v45_v8   ;;  %358 = vmatprep.subr.bf16.mxu0 %v435_v5 }
   0xc   :  { %359 = vmatpush3.bf16.msra.mxu0 %v400_v10 }
   0xd   :  { %12 = vsyncpa [#allocation3], 0  ;;  %360 = vmatprep.subr.bf16.mxu0 %v435_v5  ;;  %v406_v12 = vld [vmem:[%s575_s3] sm:$0xff]   ;;  %v403_v14 = vld [vmem:[%s574_s2 + $0x28] sm:$0xff]   ;;  %v28_v17 = vlaneseq  ;;  %vm188_vm5 = vcmask 261120  }
   0xe   :  { %375 = vmatpush3.bf16.msra.mxu1 %v406_v12  ;;  %v402_v13 = vld [vmem:[%s574_s2 + $0x20] sm:$0xff]   ;;  %v404_v15 = vld [vmem:[%s574_s2 + $0x30] sm:$0xff]   ;;  %v405_v16 = vld [vmem:[%s574_s2 + $0x38] sm:$0xff]  }
   0xf   :  { %376 = vmatprep.subr.bf16.mxu1 %v435_v5  ;;  %v29_v18 = vand.u32 127, %v28_v17  ;;  %v407_v30 = vld [vmem:[%s575_s3 + $0x8] sm:$0xff]   ;;  %v408_v36 = vld [vmem:[%s577_s5] sm:$0xff]  }
  0x10   :  { %361 = vmatpush3.bf16.msra.mxu0 %v401_v11  ;;  %v409_v37 = vld [vmem:[%s577_s5 + $0x8] sm:$0xff]   ;;  %v331_v38 = vld [vmem:[%s576_s4] ss:$0 sm:$0xff]  ;;  %s437_s5 = smov [#allocation2]  }
  0x11   :  { %362 = vmatprep.subr.bf16.mxu0 %v435_v5  ;;  %v335_v48 = vld [vmem:[%s578_s6] ss:$0 sm:$0xff]  ;;  %s312_s4 = sshll.u32 %s437_s5, 4  ;;  %s313_s4 = int_to_ptr.vmem [resolvable:$true] %s312_s4 }
  0x12   :  { %377 = vmatpush3.bf16.msra.mxu1 %v407_v30  ;;  %s410_s10 = scalar_lea.vmem %s313_s4, 256  ;;  %p415_p1 = scmp.lt.s32.totalorder %s313_s4, %s313_s4 }
  0x13   :  { %382 = vmatprep.subr.bf16.mxu1 %v435_v5  ;;  %p411_p0 = scmp.ne.s32.totalorder %s313_s4, %s410_s10  ;;  %p416_p2 = scmp.lt.s32.totalorder %s410_s10, %s410_s10 }
  0x14   :  { %363 = vmatpush3.bf16.msra.mxu0 %v402_v13 }
  0x15   :  { %364 = vmatprep.subr.bf16.mxu0 %v435_v5  ;;  %p417_p3 = por %p416_p2, %p415_p1 }
  0x17   :  { %p418_p4 = pnand %p417_p3, %p411_p0 }
  0x18   :  { %365 = vmatpush3.bf16.msra.mxu0 %v403_v14 }
  0x19   :  { %366 = vmatprep.subr.bf16.mxu0 %v435_v5 }
  0x1c   :  { %367 = vmatpush3.bf16.msra.mxu0 %v404_v15 }
  0x1d   :  { %368 = vmatprep.subr.bf16.mxu0 %v435_v5 }
  0x20   :  { %369 = vmatpush3.bf16.msra.mxu0 %v405_v16 }
  0x81   :  { %v34_v19 = vpop.permute.xlu0 %33 }
  0x82   :  { %vm38_vm1 = vcmp.eq.s32.totalorder %v29_v18, %v34_v19 }
  0x83   :  { %v40_v22 = vsel %vm38_vm1, 1.0, %v435_v5 }
  0x84   :  { %v48_v20 = vpop.permute.xlu1 %47 }
  0x85   :  { %vm52_vm2 = vcmp.eq.s32.totalorder %v29_v18, %v48_v20  ;;  %v37_v21 = vpop.permute.xlu0 %36 }
  0x86   :  { %v54_v23 = vsel %vm52_vm2, 1.0, %v435_v5  ;;  %vm39_vm3 = vcmp.eq.s32.totalorder %v29_v18, %v37_v21 }
  0x87   :  { %v41_v25 = vsel %vm39_vm3, 1.0, %v435_v5  ;;  %v56_v27 = vadd.f32 %v54_v23, %v40_v22 }
  0x88   :  { %v51_v24 = vpop.permute.xlu1 %50 }
  0x89   :  { %vm53_vm4 = vcmp.eq.s32.totalorder %v29_v18, %v51_v24 }
  0x8a   :  { %v55_v26 = vsel %vm53_vm4, 1.0, %v435_v5 }
  0x8b   :  { %v57_v28 = vadd.f32 %v55_v26, %v41_v25 }
  0x8d   :  { %v58_v29 = vpack.c.bf16 %v57_v28, %v56_v27 }
  0x8f   :  { %371 = vmatmul.mubr.bf16.vlgmr.msra.gmra.mrb[0].mxu0 %v58_v29 }
 0x162   :  { %v157_v31 = vpop.f32.mrb[0].mxu0 }
 0x163   :  { %v372_v32 = vpop.f32.mrb[1].mxu0 }
 0x164   :  { %v160_v33 = vpop.f32.mrb[2].mxu0 }
 0x165   :  { %v164_v34 = vpack.c.bf16 %v160_v33, %v157_v31  ;;  %v373_v35 = vpop.f32.mrb[3].mxu0 }
 0x167   :  { %379 = vmatmul.mubr.msk.bf16.vlgmr.msra.gmra.mrb[0].mxu1 %vm188_vm5, %v164_v34 }
 0x168   :  { %386 = vmatprep.mubr.msk.bf16.mxu1 %vm436_vm0, %v435_v5  ;;  %383 = vmatpush3.bf16.msra.mxu1 %v408_v36 }
 0x169   :  { %384 = vmatprep.subr.bf16.mxu1 %v435_v5 }
 0x16c   :  { %385 = vmatpush3.bf16.msra.mxu1 %v409_v37 }
 0x23a   :  { %v226_v39 = vpop.f32.mrb[0].mxu1 }
 0x23b   :  { %v227_v40 = vadd.f32 %v331_v38, %v226_v39  ;;  %v380_v41 = vpop.f32.mrb[1].mxu1 }
 0x23c   :  { %v229_v42 = vpop.f32.mrb[2].mxu1 }
 0x23d   :  { %v230_v43 = vadd.f32 %v331_v38, %v229_v42  ;;  %v381_v44 = vpop.f32.mrb[3].mxu1  ;;  %v233_v45 = vmax.f32 %v227_v40, 0.0 }
 0x23f   :  { %v234_v46 = vmax.f32 %v230_v43, 0.0 }
 0x241   :  { %v235_v47 = vpack.c.bf16 %v234_v46, %v233_v45 }
 0x243   :  { %387 = vmatmul.mubr.msk.bf16.vlgmr.msra.gmra.mrb[4].mxu1 %vm188_vm5, %v235_v47 }
 0x316   :  { %v296_v49 = vpop.f32.mrb[4].mxu1 }
 0x317   :  { %v297_v50 = vadd.f32 %v335_v48, %v296_v49  ;;  %v388_v51 = vpop.f32.mrb[5].mxu1 }
 0x318   :  { %v299_v52 = vpop.f32.mrb[6].mxu1 }
 0x319   :  { %v303_v53 = vmax.f32 %v297_v50, 0.0  ;;  %v300_v54 = vadd.f32 %v335_v48, %v299_v52  ;;  %v389_v55 = vpop.f32.mrb[7].mxu1 }
 0x31b   :  { %305 = vst.msk [vmem:[#allocation2] sm:$0xff] %vm188_vm5, %v303_v53  ;;  %v304_v56 = vmax.f32 %v300_v54, 0.0 }
 0x31d   :  { %306 = vst.msk [vmem:[#allocation2 + $0x8] sm:$0xff] %vm188_vm5, %v304_v56 }
 0x31e   :  { %421 = shalt.err (!%p418_p4)
}
 0x31f   :  { %s422_s12 = scalar_lea.hbm %s579_s7, 256 }
 0x320   :  { %p423_p5 = scmp.ne.s32.totalorder %s579_s7, %s422_s12  ;;  %p426_p6 = scmp.lt.u32.totalorder %s422_s12, %s579_s7 }
 0x322   :  { %p428_p7 = pnand %p426_p6, %p423_p5 }
 0x324   :  { %431 = shalt.err (!%p428_p7)
}
 0x325   :  { %s438_s15 = smov 128   ;;  %s439_s16 = smov 8  }
 0x326   :  { %318 = dma.vmem_to_hbm [thread:$0]  %s313_s4, 256, %s579_s7, [#allocation3], %s438_s15, %s438_s15, %s439_s16  }
 0x327   :  { %432 = dma.done.wait [#allocation3], 256  }
 0x328   :  { %433 = vsyncadd [#allocation3], 4294967040 }
 0x329   :  { %322 = vsyncpa [#allocation3], 1 }

</bundles_post_ra>
